<compile_context>
chip_gen: v5e
topology: v5e:2x2
jax: 0.10.0
libtpu: 0.0.40
codegen_flags: <defaults>
</compile_context>

<pallas_src>
import jax
import jax.numpy as jnp
from jax.experimental import pallas as pl
from jax.experimental.pallas import tpu as pltpu


def mlp_kernel(x_ref, w1_ref, w2_ref, w3_ref, o_ref):
    # x_ref : (TB, 100) bf16 tile (pipelined)
    # w1_ref: (100, 128) bf16, VMEM-resident
    # w2_ref: (128, 128) bf16, VMEM-resident
    # w3_ref: (128, 16)  bf16, VMEM-resident
    # o_ref : (TB, 16)   f32 tile (pipelined)
    x = x_ref[...]
    h1 = jnp.dot(x, w1_ref[...], preferred_element_type=jnp.float32)
    h1 = jnp.maximum(h1, 0.0)                       # ReLU in f32 (v5e-safe)
    h2 = jnp.dot(h1.astype(jnp.bfloat16), w2_ref[...],
                 preferred_element_type=jnp.float32)
    h2 = jnp.maximum(h2, 0.0)                       # ReLU in f32
    out = jnp.dot(h2.astype(jnp.bfloat16), w3_ref[...],
                  preferred_element_type=jnp.float32)
    o_ref[...] = out.astype(o_ref.dtype)


def neural_network_forward(x, w1, w2, w3, *, tb_max=4096):
    """Forward pass matching NeuralNetwork.forward.

    x  : (B, 10, 10) float32
    w1 : (32, 100) float32   (PyTorch Linear weight layout: (out, in))
    w2 : (16, 32)  float32
    w3 : (10, 16)  float32
    returns (B, 10) float32 logits
    """
    B = x.shape[0]
    in_f = 10 * 10
    x_flat = x.reshape(B, -1).astype(jnp.bfloat16)        # nn.Flatten -> (B, 100)

    # ---- batch tiling: TB multiple of 16 (bf16 packing), capped so that
    #      num_tiles >= 2 whenever the batch is big enough (v7x megacore). ----
    half = pl.cdiv(B, 2)
    TB = min(tb_max, max(16, ((half + 15) // 16) * 16))
    num_tiles = pl.cdiv(B, TB)
    B_total = num_tiles * TB

    # Batch-dim pad only (single fused producer); no lane padding of the input.
    if B_total != B:
        x_flat = jnp.pad(x_flat, ((0, B_total - B), (0, 0)))

    # ---- zero-padded bf16 weights (zero columns/rows keep math identical) ----
    def pad_w(w_t, rows, cols):                            # w_t is (in, out)
        return jnp.pad(w_t.astype(jnp.bfloat16),
                       ((0, rows - w_t.shape[0]), (0, cols - w_t.shape[1])))

    w1p = pad_w(w1.T, in_f, 128)    # (100, 128)
    w2p = pad_w(w2.T, 128, 128)     # (128, 128)
    w3p = pad_w(w3.T, 128, 16)      # (128, 16)

    flops = 2 * B_total * (in_f * 128 + 128 * 128 + 128 * 16)
    bytes_accessed = (B_total * in_f * 2                        # bf16 input
                      + (in_f * 128 + 128 * 128 + 128 * 16) * 2  # bf16 weights
                      + B_total * 16 * 4)                       # narrow f32 out

    out_pad = pl.pallas_call(
        mlp_kernel,
        out_shape=jax.ShapeDtypeStruct((B_total, 16), jnp.float32),
        grid=(num_tiles,),
        in_specs=[
            pl.BlockSpec((TB, in_f), lambda i: (i, 0)),    # pipelined x tile
            pl.BlockSpec((in_f, 128), lambda i: (0, 0)),   # weights resident
            pl.BlockSpec((128, 128), lambda i: (0, 0)),
            pl.BlockSpec((128, 16), lambda i: (0, 0)),
        ],
        out_specs=pl.BlockSpec((TB, 16), lambda i: (i, 0)),
        compiler_params=pltpu.CompilerParams(
            dimension_semantics=("parallel",)),            # megacore on v7x
        cost_estimate=pl.CostEstimate(
            flops=flops, transcendentals=0, bytes_accessed=bytes_accessed),
    )(x_flat, w1p, w2p, w3p)

    return out_pad[:B, :10]


def init_params(key):
    """Deterministic init mirroring nn.Linear's U(-1/sqrt(in), 1/sqrt(in))."""
    k1, k2, k3 = jax.random.split(key, 3)

    def lin(k, out_f, in_f):
        bound = 1.0 / jnp.sqrt(jnp.float32(in_f))
        return jax.random.uniform(k, (out_f, in_f), jnp.float32, -bound, bound)

    w1 = lin(k1, 32, 100)   # layer1: Linear(10*10, 32, bias=False)
    w2 = lin(k2, 16, 32)    # layer2: Linear(32, 16, bias=False)
    w3 = lin(k3, 10, 16)    # layer3: Linear(16, 10, bias=False)
    return w1, w2, w3


def _reference(x, w1, w2, w3):
    xf = x.reshape(x.shape[0], -1)
    h = jnp.maximum(xf @ w1.T, 0.0)
    h = jnp.maximum(h @ w2.T, 0.0)
    return h @ w3.T


if __name__ == "__main__":
    key = jax.random.PRNGKey(0)
    k_x, k_x2, k_p = jax.random.split(key, 3)
    w1, w2, w3 = init_params(k_p)

    # Small single-tile batch.
    B = 8
    x = jax.random.normal(k_x, (B, 10, 10), jnp.float32)
    logits = neural_network_forward(x, w1, w2, w3)
    jax.block_until_ready(logits)
    ref = _reference(x, w1, w2, w3)
    assert logits.shape == (B, 10)
    assert jnp.allclose(logits, ref, atol=3e-2, rtol=3e-2), (
        jnp.max(jnp.abs(logits - ref)))

    # Slightly larger batch exercising multi-tile grid + batch padding.
    B2 = 40
    x2 = jax.random.normal(k_x2, (B2, 10, 10), jnp.float32)
    logits2 = neural_network_forward(x2, w1, w2, w3)
    jax.block_until_ready(logits2)
    ref2 = _reference(x2, w1, w2, w3)
    assert logits2.shape == (B2, 10)
    assert jnp.allclose(logits2, ref2, atol=3e-2, rtol=3e-2), (
        jnp.max(jnp.abs(logits2 - ref2)))

    print("KERNEL_OK")
</pallas_src>

<mosaic_0001>
module attributes {stable_mosaic.version = 11 : i64} {
  func.func @mlp_kernel(%arg0: i32, %arg1: memref<16x100xbf16, #tpu.memory_space<vmem>>, %arg2: memref<100x128xbf16, #tpu.memory_space<vmem>>, %arg3: memref<128x128xbf16, #tpu.memory_space<vmem>>, %arg4: memref<128x16xbf16, #tpu.memory_space<vmem>>, %arg5: memref<16x16xf32, #tpu.memory_space<vmem>>) attributes {dimension_semantics = [#tpu.dimension_semantics<parallel>], iteration_bounds = array<i64: 1>, scalar_prefetch = 0 : i64, scratch_operands = 0 : i64, tpu.core_type = #tpu.core_type<tc>, window_params = [{transform_indices = @transform_0, window_bounds = array<i64: 16, 100>}, {pipeline_mode = #tpu.pipeline_mode<synchronous>, transform_indices = @transform_1, window_bounds = array<i64: 100, 128>}, {pipeline_mode = #tpu.pipeline_mode<synchronous>, transform_indices = @transform_2, window_bounds = array<i64: 128, 128>}, {pipeline_mode = #tpu.pipeline_mode<synchronous>, transform_indices = @transform_3, window_bounds = array<i64: 128, 16>}, {transform_indices = @transform_4, window_bounds = array<i64: 16, 16>}]} {
    %c0 = arith.constant 0 : index
    %c0_0 = arith.constant 0 : index
    %0 = vector.load %arg1[%c0, %c0_0] : memref<16x100xbf16, #tpu.memory_space<vmem>>, vector<16x100xbf16>
    %c0_1 = arith.constant 0 : index
    %c0_2 = arith.constant 0 : index
    %1 = vector.load %arg2[%c0_1, %c0_2] : memref<100x128xbf16, #tpu.memory_space<vmem>>, vector<100x128xbf16>
    %cst = arith.constant dense<0.000000e+00> : vector<16x128xf32>
    %2 = tpu.matmul %0, %1, %cst {dimension_numbers = #tpu.dot_dimension_numbers<[1], [0], [0], [1], [0, 0, 1, 1], [], []>} : vector<16x100xbf16>, vector<100x128xbf16>, vector<16x128xf32> -> vector<16x128xf32>
    %cst_3 = arith.constant 0.000000e+00 : f32
    %3 = vector.broadcast %cst_3 : f32 to vector<16x128xf32>
    %4 = arith.maximumf %2, %3 : vector<16x128xf32>
    %5 = arith.truncf %4 : vector<16x128xf32> to vector<16x128xbf16>
    %c0_4 = arith.constant 0 : index
    %c0_5 = arith.constant 0 : index
    %6 = vector.load %arg3[%c0_4, %c0_5] : memref<128x128xbf16, #tpu.memory_space<vmem>>, vector<128x128xbf16>
    %cst_6 = arith.constant dense<0.000000e+00> : vector<16x128xf32>
    %7 = tpu.matmul %5, %6, %cst_6 {dimension_numbers = #tpu.dot_dimension_numbers<[1], [0], [0], [1], [0, 0, 1, 1], [], []>} : vector<16x128xbf16>, vector<128x128xbf16>, vector<16x128xf32> -> vector<16x128xf32>
    %cst_7 = arith.constant 0.000000e+00 : f32
    %8 = vector.broadcast %cst_7 : f32 to vector<16x128xf32>
    %9 = arith.maximumf %7, %8 : vector<16x128xf32>
    %10 = arith.truncf %9 : vector<16x128xf32> to vector<16x128xbf16>
    %c0_8 = arith.constant 0 : index
    %c0_9 = arith.constant 0 : index
    %11 = vector.load %arg4[%c0_8, %c0_9] : memref<128x16xbf16, #tpu.memory_space<vmem>>, vector<128x16xbf16>
    %cst_10 = arith.constant dense<0.000000e+00> : vector<16x16xf32>
    %12 = tpu.matmul %10, %11, %cst_10 {dimension_numbers = #tpu.dot_dimension_numbers<[1], [0], [0], [1], [0, 0, 1, 1], [], []>} : vector<16x128xbf16>, vector<128x16xbf16>, vector<16x16xf32> -> vector<16x16xf32>
    %c0_11 = arith.constant 0 : index
    %c0_12 = arith.constant 0 : index
    %13 = vector.load %arg5[%c0_11, %c0_12] : memref<16x16xf32, #tpu.memory_space<vmem>>, vector<16x16xf32>
    tpu.vector_store %arg5[%c0_11, %c0_12], %12 {strides = array<i32>} : memref<16x16xf32, #tpu.memory_space<vmem>>, vector<16x16xf32>,
    return
  }
  func.func @transform_0(%arg0: i32) -> (i32, i32) {
    %c0_i32 = arith.constant 0 : i32
    %c0_i32_0 = arith.constant 0 : i32
    return %arg0, %c0_i32 : i32, i32
  }
  func.func @transform_1(%arg0: i32) -> (i32, i32) {
    %c0_i32 = arith.constant 0 : i32
    %c0_i32_0 = arith.constant 0 : i32
    %c0_i32_1 = arith.constant 0 : i32
    return %c0_i32, %c0_i32_0 : i32, i32
  }
  func.func @transform_2(%arg0: i32) -> (i32, i32) {
    %c0_i32 = arith.constant 0 : i32
    %c0_i32_0 = arith.constant 0 : i32
    %c0_i32_1 = arith.constant 0 : i32
    return %c0_i32, %c0_i32_0 : i32, i32
  }
  func.func @transform_3(%arg0: i32) -> (i32, i32) {
    %c0_i32 = arith.constant 0 : i32
    %c0_i32_0 = arith.constant 0 : i32
    %c0_i32_1 = arith.constant 0 : i32
    return %c0_i32, %c0_i32_0 : i32, i32
  }
  func.func @transform_4(%arg0: i32) -> (i32, i32) {
    %c0_i32 = arith.constant 0 : i32
    %c0_i32_0 = arith.constant 0 : i32
    return %arg0, %c0_i32 : i32, i32
  }
}

</mosaic_0001>

<bundles_post_ra>
// kernel: tpu_custom_call.1
= control target key start
LH: loop header
LB: loop body
LE: loop exit
PB: predicated region body
PF: predicated region fallthrough
CT: control target
= control target key end

     0   :  { %9 = vsyncpa [#allocation3], 0  ;;  %s562_s0 = inlined_call_operand.vmem [shape: bf16[16,100], index: 0, kind: input, shape index: {}]   ;;  %s563_s1 = inlined_call_operand.hbm [shape: bf16[100,128], index: 1, kind: input, shape index: {}]   ;;  %s564_s2 = inlined_call_operand.vmem [shape: bf16[128,128], index: 2, kind: input, shape index: {}]   ;;  %s565_s3 = inlined_call_operand.vmem [shape: bf16[128,16], index: 3, kind: input, shape index: {}]   ;;  %s566_s4 = inlined_call_operand.hbm [shape: f32[16,16], index: 4, kind: output, shape index: {}]  }
   0x1   :  { %10 = vsyncpa [#allocation4], 0  ;;  %s17_s17 = sshll.u32 %s563_s1, 4  ;;  %s474_s18 = smov [#allocation2]   ;;  %s18_s17 = int_to_ptr.hbm [resolvable:$true] %s17_s17 }
   0x2   :  { %s19_s19 = sshll.u32 %s474_s18, 4  ;;  %s475_s20 = smov 64   ;;  %s20_s19 = int_to_ptr.vmem [resolvable:$true] %s19_s19 }
   0x3   :  { %s476_s21 = smov 4  }
   0x4   :  { %25 = dma.hbm_to_vmem [thread:$0]  %s18_s17, 832, %s20_s19, [#allocation3], %s475_s20, %s475_s20, %s476_s21  }
   0x5   :  { %470 = dma.done.wait [#allocation3], 832  }
   0x6   :  { %471 = vsyncadd [#allocation3], 4294966464  ;;  %v49_v0 = vld [vmem:[#allocation2 + $0x30] sm:$0x3]  ;;  %vm98_vm0 = vcmask 1041408   ;;  %v407_v2 = vld [vmem:[%s564_s2 + $0x38] sm:$0xff] }
   0x7   :  { %v80_v1 = vunpack.c.l.b16 %v49_v0  ;;  %183 = vmatpush.bf16.msra.mxu1 %v407_v2  ;;  %v406_v4 = vld [vmem:[%s564_s2 + $0x30] sm:$0xff]  ;;  %v399_v6 = vld [vmem:[#allocation2 + $0x28] sm:$0xff]  ;;  %v398_v8 = vld [vmem:[#allocation2 + $0x20] sm:$0xff]  ;;  %vm94_vm1 = vcmask 818176   ;;  %vm278_vm2 = vcmask 130048   ;;  %s477_s26 = smov [#allocation5]  }
   0x8   :  { %v405_v7 = vld [vmem:[%s564_s2 + $0x28] sm:$0xff]  ;;  %v404_v9 = vld [vmem:[%s564_s2 + $0x20] sm:$0xff]  ;;  %v397_v10 = vld [vmem:[#allocation2 + $0x18] sm:$0xff]  ;;  %s285_s27 = sshll.u32 %s477_s26, 4  ;;  %s287_s30 = sshll.u32 %s566_s4, 4  ;;  %s286_s27 = int_to_ptr.vmem [resolvable:$true] %s285_s27  ;;  %s288_s30 = int_to_ptr.hbm [resolvable:$true] %s287_s30 }
   0x9   :  { %v87_v3 = vpack.c.b16 %v80_v1, %v80_v1  ;;  %v403_v11 = vld [vmem:[%s564_s2 + $0x18] sm:$0xff]  ;;  %v396_v12 = vld [vmem:[#allocation2 + $0x10] sm:$0xff]  ;;  %v395_v13 = vld [vmem:[#allocation2 + $0x8] sm:$0xff]  ;;  %s479_s5 = smov 8  }
   0xa   :  { %v394_v14 = vld [vmem:[#allocation2] sm:$0xff]  ;;  %v402_v16 = vld [vmem:[%s564_s2 + $0x10] sm:$0xff]  ;;  %v401_v17 = vld [vmem:[%s564_s2 + $0x8] sm:$0xff] }
   0xb   :  { %v100_v5 = vsel %vm98_vm0, %v87_v3, 0  ;;  %184 = vmatpush.bf16.msra.mxu1 %v406_v4  ;;  %v393_v15 = vld [vmem:[%s562_s0] sm:$0xff]  ;;  %v415_v19 = vld [vmem:[%s565_s3 + $0x38] sm:$0xff]  ;;  %v414_v20 = vld [vmem:[%s565_s3 + $0x30] sm:$0xff] }
   0xc   :  { %103 = vmatpush.bf16.msra.mxu0 %v100_v5  ;;  %v400_v18 = vld [vmem:[%s564_s2] sm:$0xff]  ;;  %264 = vmatpush.bf16.msra.mxu2 %v415_v19  ;;  %v413_v21 = vld [vmem:[%s565_s3 + $0x28] sm:$0xff]  ;;  %v411_v23 = vld [vmem:[%s565_s3 + $0x18] sm:$0xff] }
   0xd   :  { %v412_v22 = vld [vmem:[%s565_s3 + $0x20] sm:$0xff]  ;;  %v410_v29 = vld [vmem:[%s565_s3 + $0x10] sm:$0xff]  ;;  %v409_v30 = vld [vmem:[%s565_s3 + $0x8] sm:$0xff] }
   0xe   :  { %v408_v31 = vld [vmem:[%s565_s3] sm:$0xff]  ;;  %s478_s3 = smov 128  }
   0xf   :  { %185 = vmatpush.bf16.msra.mxu1 %v405_v7 }
  0x10   :  { %104 = vmatpush.bf16.msra.mxu0 %v399_v6  ;;  %265 = vmatpush.bf16.msra.mxu2 %v414_v20 }
  0x13   :  { %186 = vmatpush.bf16.msra.mxu1 %v404_v9 }
  0x14   :  { %105 = vmatpush.bf16.msra.mxu0 %v398_v8  ;;  %266 = vmatpush.bf16.msra.mxu2 %v413_v21 }
  0x17   :  { %187 = vmatpush.bf16.msra.mxu1 %v403_v11 }
  0x18   :  { %106 = vmatpush.bf16.msra.mxu0 %v397_v10  ;;  %267 = vmatpush.bf16.msra.mxu2 %v412_v22 }
  0x1b   :  { %188 = vmatpush.bf16.msra.mxu1 %v402_v16 }
  0x1c   :  { %107 = vmatpush.bf16.msra.mxu0 %v396_v12  ;;  %268 = vmatpush.bf16.msra.mxu2 %v411_v23 }
  0x1f   :  { %189 = vmatpush.bf16.msra.mxu1 %v401_v17 }
  0x20   :  { %108 = vmatpush.bf16.msra.mxu0 %v395_v13  ;;  %269 = vmatpush.bf16.msra.mxu2 %v410_v29 }
  0x23   :  { %190 = vmatpush.bf16.msra.mxu1 %v400_v18 }
  0x24   :  { %109 = vmatpush.bf16.msra.mxu0 %v394_v14  ;;  %270 = vmatpush.bf16.msra.mxu2 %v409_v30 }
  0x27   :  { %328 = vmatmul.msk.bf16.vlgmr.msra.gmra.mxu0 %vm94_vm1, %v393_v15 }
  0x28   :  { %271 = vmatpush.bf16.msra.mxu2 %v408_v31 }
  0xa4   :  { %v111_v24 = vpop.f32.mrf.mxu0 }
  0xa5   :  { %v116_v26 = vmax.f32 %v111_v24, 0.0 }
  0xac   :  { %v113_v25 = vpop.f32.mrf.mxu0 }
  0xad   :  { %v117_v27 = vmax.f32 %v113_v25, 0.0 }
  0xaf   :  { %v118_v28 = vpack.c.bf16 %v117_v27, %v116_v26 }
  0xb1   :  { %191 = vmatmul.bf16.vlgmr.msra.gmra.mxu1 %v118_v28 }
 0x12e   :  { %v192_v32 = vpop.f32.mrf.mxu1 }
 0x12f   :  { %v197_v34 = vmax.f32 %v192_v32, 0.0 }
 0x136   :  { %v194_v33 = vpop.f32.mrf.mxu1 }
 0x137   :  { %v198_v35 = vmax.f32 %v194_v33, 0.0 }
 0x139   :  { %v199_v36 = vpack.c.bf16 %v198_v35, %v197_v34 }
 0x13b   :  { %272 = vmatmul.bf16.vlgmr.msra.gmra.mxu2 %v199_v36 }
 0x1be   :  { %v273_v37 = vpop.f32.mrf.mxu2 }
 0x1bf   :  { %279 = vst.msk [vmem:[#allocation5] sm:$0xff] %vm278_vm2, %v273_v37 }
 0x1c6   :  { %v275_v38 = vpop.f32.mrf.mxu2 }
 0x1c7   :  { %280 = vst.msk [vmem:[#allocation5 + $0x8] sm:$0xff] %vm278_vm2, %v275_v38 }
 0x1c8   :  { %293 = dma.vmem_to_hbm [thread:$0]  %s286_s27, 256, %s288_s30, [#allocation4], %s478_s3, %s478_s3, %s479_s5  }
 0x1c9   :  { %472 = dma.done.wait [#allocation4], 256  }
 0x1ca   :  { %473 = vsyncadd [#allocation4], 4294967040 }
 0x1cb   :  { %298 = vsyncpa [#allocation3], 1 }
 0x1cc   :  { %299 = vsyncpa [#allocation4], 1 }

</bundles_post_ra>
